<compile_context>
chip_gen: v7x
topology: tpu7x:2x2x1
jax: 0.10.0
libtpu: 0.0.40
codegen_flags: <defaults>
</compile_context>

<pallas_src>
import jax
import jax.numpy as jnp
from jax import lax
from jax.experimental import pallas as pl
from jax.experimental.pallas import tpu as pltpu

EPS = 1e-5
LANE = 128
Y_DTYPE = jnp.bfloat16      # dtype of the conv intermediate between the two passes
VMEM_LIMIT = 48 * 1024 * 1024


def _round_up(x, m):
    return (x + m - 1) // m * m


def _pick_tile(l_out):
    """Lane-dense L tile: prefer big tiles, accept <=~12.5% padding waste."""
    l128 = _round_up(l_out, LANE)
    if l128 <= 1024:
        return l128                      # single tile, no waste beyond 128-rounding
    for c in (1024, 512, 256):
        if _round_up(l_out, c) - l128 <= l128 // 8:
            return c
    return LANE                          # unreachable for l128 > 1024 (256 always ok)


def conv_block_forward(x, weight, bias, gamma, beta, *, stride, padding):
    """ConvBlock forward. x: (N, Cin, L) f32; weight: (Cout, Cin, K).

    `bias` is accepted for interface parity but unused: training-mode BN's mean
    subtraction cancels a per-channel constant bias exactly.
    Returns (N, Cout, L_out) float32 in NCL layout (same as the PyTorch module).
    """
    del bias
    N, Cin, L = x.shape
    Cout, _, K = weight.shape
    s = int(stride)
    L_out = (L + 2 * padding - K) // s + 1
    assert L_out > 0

    # Polyphase fold: conv(stride=s, K) == conv(stride=1, Q=ceil(K/s)) over s*Cin
    # phase channels, where xph[r*Cin+ci, m] = x_pad[ci, m*s + r] (reshape only, no
    # duplication) and wq[q, co, r*Cin+ci] = w[co, ci, q*s + r].
    Q = -(-K // s)
    assert Q <= LANE, "taps per phase exceed the 128-column halo"
    Cin2 = Cin * s
    Cin2_p = _round_up(Cin2, 16)          # bf16 sublane quantum
    Cout_p = _round_up(Cout, 16)          # bf16 sublane quantum (y intermediate)

    tl = _pick_tile(L_out)
    L_out_p = _round_up(L_out, tl)
    n_l = L_out_p // tl
    blk = tl // LANE
    M_p = L_out_p + LANE                  # phase columns incl. halo for the last tile
    count = N * L_out                     # true #positions for BN statistics
    y_bytes = jnp.dtype(Y_DTYPE).itemsize
    mask_tail = L_out < L_out_p

    # ---- input phase-fold (pad / reshape only; no im2col duplication) -------------
    total = M_p * s
    xpad = jnp.pad(x, ((0, 0), (0, 0), (padding, padding)))
    cur = L + 2 * padding
    if cur < total:
        xpad = jnp.pad(xpad, ((0, 0), (0, 0), (0, total - cur)))
    else:
        xpad = xpad[:, :, :total]
    if s == 1:
        xph = xpad                                           # (N, Cin, M_p)
    else:
        xph = xpad.reshape(N, Cin, M_p, s).transpose(0, 3, 1, 2).reshape(N, Cin2, M_p)
    xph = jnp.pad(xph, ((0, 0), (0, Cin2_p - Cin2), (0, 0))).astype(jnp.bfloat16)

    # ---- folded weights: (Q, Cout_p, Cin2_p) bf16 ----------------------------------
    wq = jnp.pad(weight, ((0, 0), (0, 0), (0, Q * s - K)))              # (Cout,Cin,Q*s)
    wq = wq.reshape(Cout, Cin, Q, s).transpose(2, 0, 3, 1).reshape(Q, Cout, Cin2)
    wq = jnp.pad(wq, ((0, 0), (0, Cout_p - Cout), (0, Cin2_p - Cin2)))
    wq = wq.astype(jnp.bfloat16)

    # ---- pass 1: Q shifted matmuls (in-kernel im2col) + BN-stats accumulation ------
    def conv_stats_kernel(xa_ref, xb_ref, w_ref, y_ref, st_ref):
        # xa_ref: (1, Cin2_p, tl)    bf16  this L-tile
        # xb_ref: (1, Cin2_p, LANE)  bf16  128-column halo from the next tile
        # w_ref : (Q, Cout_p, Cin2_p) bf16 (constant index map -> fetched once)
        # y_ref : (1, Cout_p, tl)    Y_DTYPE conv activations for this tile
        # st_ref: (1, Cout_p, LANE)  f32   lane0=sum, lane1=sumsq; revisited over j
        j = pl.program_id(1)
        x_win = jnp.concatenate([xa_ref[0], xb_ref[0]], axis=1)   # (Cin2_p, tl+LANE)
        y = jnp.dot(w_ref[0], x_win[:, 0:tl], preferred_element_type=jnp.float32)
        for q in range(1, Q):                                     # static unroll
            y = y + jnp.dot(w_ref[q], x_win[:, q:q + tl],
                            preferred_element_type=jnp.float32)
        if mask_tail:
            lane = lax.broadcasted_iota(jnp.int32, y.shape, 1)
            y = jnp.where(lane + j * tl < L_out, y, 0.0)          # zero padded tail
        y_ref[0] = y.astype(y_ref.dtype)
        # Per-channel partials from the f32 accumulator (before any downcast).
        ssum = jnp.sum(y, axis=1, keepdims=True)                  # (Cout_p, 1)
        ssq = jnp.sum(y * y, axis=1, keepdims=True)               # (Cout_p, 1)
        lane = lax.broadcasted_iota(jnp.int32, (Cout_p, LANE), 1)
        part = jnp.where(lane == 0, ssum, 0.0) + jnp.where(lane == 1, ssq, 0.0)

        @pl.when(j == 0)
        def _():
            st_ref[...] = jnp.zeros_like(st_ref)
        st_ref[0] += part

    cparams1 = pltpu.CompilerParams(
        dimension_semantics=("parallel", "arbitrary"),   # stats revisit the j axis
        vmem_limit_bytes=VMEM_LIMIT)
    cost1 = pl.CostEstimate(
        flops=2 * N * L_out_p * Cin2_p * Q * Cout_p,
        transcendentals=0,
        bytes_accessed=(xph.size * 2 + N * n_l * Cin2_p * LANE * 2 + wq.size * 2
                        + N * Cout_p * L_out_p * y_bytes + N * Cout_p * LANE * 4))

    y_act, stats = pl.pallas_call(
        conv_stats_kernel,
        grid=(N, n_l),
        in_specs=[
            pl.BlockSpec((1, Cin2_p, tl), lambda n, j: (n, 0, j)),
            pl.BlockSpec((1, Cin2_p, LANE), lambda n, j: (n, 0, (j + 1) * blk)),
            pl.BlockSpec((Q, Cout_p, Cin2_p), lambda n, j: (0, 0, 0)),
        ],
        out_specs=(
            pl.BlockSpec((1, Cout_p, tl), lambda n, j: (n, 0, j)),
            pl.BlockSpec((1, Cout_p, LANE), lambda n, j: (n, 0, 0)),
        ),
        out_shape=(
            jax.ShapeDtypeStruct((N, Cout_p, L_out_p), Y_DTYPE),
            jax.ShapeDtypeStruct((N, Cout_p, LANE), jnp.float32),
        ),
        compiler_params=cparams1,
        cost_estimate=cost1,
    )(xph, xph, wq)

    # ---- global BN stats -> per-channel scale/shift (tiny, plain JAX) --------------
    tot = jnp.sum(stats, axis=0)                          # (Cout_p, LANE)
    s_sum, s_sq = tot[:, 0], tot[:, 1]
    mean = s_sum / count
    var = jnp.maximum(s_sq / count - mean * mean, 0.0)
    gamma_p = jnp.pad(gamma.astype(jnp.float32), (0, Cout_p - Cout))
    beta_p = jnp.pad(beta.astype(jnp.float32), (0, Cout_p - Cout))
    a = gamma_p * lax.rsqrt(var + EPS)
    c = beta_p - a * mean
    a2 = a.reshape(Cout_p, 1)
    c2 = c.reshape(Cout_p, 1)

    # ---- pass 2: o = max(a*y + c, 0), lane-dense NCL output ------------------------
    def bn_relu_kernel(y_ref, a_ref, c_ref, o_ref):
        yv = y_ref[0].astype(jnp.float32)
        o_ref[0] = jnp.maximum(yv * a_ref[...] + c_ref[...], 0.0)

    cparams2 = pltpu.CompilerParams(
        dimension_semantics=("parallel", "parallel"),
        vmem_limit_bytes=VMEM_LIMIT)
    cost2 = pl.CostEstimate(
        flops=3 * N * Cout_p * L_out_p,
        transcendentals=0,
        bytes_accessed=N * Cout_p * L_out_p * (y_bytes + 4) + 2 * Cout_p * 4)
    out = pl.pallas_call(
        bn_relu_kernel,
        grid=(N, n_l),
        in_specs=[
            pl.BlockSpec((1, Cout_p, tl), lambda n, j: (n, 0, j)),
            pl.BlockSpec((Cout_p, 1), lambda n, j: (0, 0)),
            pl.BlockSpec((Cout_p, 1), lambda n, j: (0, 0)),
        ],
        out_specs=pl.BlockSpec((1, Cout_p, tl), lambda n, j: (n, 0, j)),
        out_shape=jax.ShapeDtypeStruct((N, Cout_p, L_out_p), jnp.float32),
        compiler_params=cparams2,
        cost_estimate=cost2,
    )(y_act, a2, c2)

    # Strip channel / length padding; already NCL -> no trailing transpose.
    return out[:, :Cout, :L_out]


if __name__ == "__main__":
    # Module hyperparameters (small, consistent with ConvBlock.__init__)
    in_channels, out_channels = 4, 8
    kernel_size, stride, padding = 3, 1, 1
    N, L = 2, 16

    key = jax.random.PRNGKey(0)
    kx, kw, kb = jax.random.split(key, 3)

    x = jax.random.normal(kx, (N, in_channels, L), dtype=jnp.float32)
    fan_in = in_channels * kernel_size
    bound = 1.0 / (fan_in ** 0.5)
    weight = jax.random.uniform(
        kw, (out_channels, in_channels, kernel_size),
        minval=-bound, maxval=bound, dtype=jnp.float32)
    bias = jax.random.uniform(
        kb, (out_channels,), minval=-bound, maxval=bound, dtype=jnp.float32)
    gamma = jnp.ones((out_channels,), dtype=jnp.float32)
    beta = jnp.zeros((out_channels,), dtype=jnp.float32)

    y = conv_block_forward(x, weight, bias, gamma, beta,
                           stride=stride, padding=padding)
    jax.block_until_ready(y)

    L_out = (L + 2 * padding - kernel_size) // stride + 1
    assert y.shape == (N, out_channels, L_out)

    # Reference A: exact PyTorch-module semantics (f32 conv + bias, training-mode BN).
    conv_f = lax.conv_general_dilated(
        x, weight, window_strides=(stride,), padding=[(padding, padding)],
        dimension_numbers=("NCH", "OIH", "NCH")) + bias[None, :, None]
    mf = conv_f.mean(axis=(0, 2), keepdims=True)
    vf = ((conv_f - mf) ** 2).mean(axis=(0, 2), keepdims=True)
    ref_exact = jnp.maximum(
        gamma[None, :, None] * (conv_f - mf) * lax.rsqrt(vf + EPS)
        + beta[None, :, None], 0.0)

    # Reference B: same quantization path as the kernel (bf16 x/w, f32 conv + stats,
    # bf16 intermediate activations, conv bias dropped -> cancelled by BN).
    xr = x.astype(jnp.bfloat16).astype(jnp.float32)
    wr = weight.astype(jnp.bfloat16).astype(jnp.float32)
    conv_q = lax.conv_general_dilated(
        xr, wr, window_strides=(stride,), padding=[(padding, padding)],
        dimension_numbers=("NCH", "OIH", "NCH"))
    mq = conv_q.mean(axis=(0, 2), keepdims=True)
    vq = ((conv_q - mq) ** 2).mean(axis=(0, 2), keepdims=True)
    aq = gamma[None, :, None] * lax.rsqrt(vq + EPS)
    cq = beta[None, :, None] - aq * mq
    conv_q16 = conv_q.astype(Y_DTYPE).astype(jnp.float32)
    ref_matched = jnp.maximum(aq * conv_q16 + cq, 0.0)

    # Tight check vs. the matched-quantization reference; looser sanity check vs. the
    # full-f32 module (covers the documented bf16 input/intermediate rounding).
    assert jnp.allclose(y, ref_matched, atol=2e-2, rtol=2e-2), \
        float(jnp.max(jnp.abs(y - ref_matched)))
    assert jnp.allclose(y, ref_exact, atol=5e-2, rtol=5e-2), \
        float(jnp.max(jnp.abs(y - ref_exact)))

    print("KERNEL_OK")
</pallas_src>

<mosaic_0001>
module attributes {stable_mosaic.version = 11 : i64} {
  func.func @conv_stats_kernel(%arg0: i32, %arg1: i32, %arg2: memref<1x16x128xbf16, #tpu.memory_space<vmem>>, %arg3: memref<1x16x128xbf16, #tpu.memory_space<vmem>>, %arg4: memref<3x16x16xbf16, #tpu.memory_space<vmem>>, %arg5: memref<1x16x128xbf16, #tpu.memory_space<vmem>>, %arg6: memref<1x16x128xf32, #tpu.memory_space<vmem>>) attributes {dimension_semantics = [#tpu.dimension_semantics<parallel>, #tpu.dimension_semantics<arbitrary>], iteration_bounds = array<i64: 2, 1>, scalar_prefetch = 0 : i64, scratch_operands = 0 : i64, tpu.core_type = #tpu.core_type<tc>, window_params = [{transform_indices = @transform_0, window_bounds = array<i64: 1, 16, 128>}, {transform_indices = @transform_1, window_bounds = array<i64: 1, 16, 128>}, {pipeline_mode = #tpu.pipeline_mode<synchronous>, transform_indices = @transform_2, window_bounds = array<i64: 3, 16, 16>}, {transform_indices = @transform_3, window_bounds = array<i64: 1, 16, 128>}, {transform_indices = @transform_4, window_bounds = array<i64: 1, 16, 128>}]} {
    %c0 = arith.constant 0 : index
    %c0_0 = arith.constant 0 : index
    %c0_1 = arith.constant 0 : index
    %0 = vector.load %arg2[%c0, %c0_0, %c0_1] : memref<1x16x128xbf16, #tpu.memory_space<vmem>>, vector<1x16x128xbf16>
    %1 = vector.shape_cast %0 : vector<1x16x128xbf16> to vector<16x128xbf16>
    %c0_2 = arith.constant 0 : index
    %c0_3 = arith.constant 0 : index
    %c0_4 = arith.constant 0 : index
    %2 = vector.load %arg3[%c0_2, %c0_3, %c0_4] : memref<1x16x128xbf16, #tpu.memory_space<vmem>>, vector<1x16x128xbf16>
    %3 = vector.shape_cast %2 : vector<1x16x128xbf16> to vector<16x128xbf16>
    %4 = tpu.concatenate %1, %3 in 1 : vector<16x128xbf16>, vector<16x128xbf16> -> vector<16x256xbf16>
    %c0_5 = arith.constant 0 : index
    %c0_6 = arith.constant 0 : index
    %c0_7 = arith.constant 0 : index
    %5 = vector.load %arg4[%c0_5, %c0_6, %c0_7] : memref<3x16x16xbf16, #tpu.memory_space<vmem>>, vector<1x16x16xbf16>
    %6 = vector.shape_cast %5 : vector<1x16x16xbf16> to vector<16x16xbf16>
    %7 = vector.extract_strided_slice %4 {offsets = [0, 0], sizes = [16, 128], strides = [1, 1]} : vector<16x256xbf16> to vector<16x128xbf16>
    %cst = arith.constant dense<0.000000e+00> : vector<16x128xf32>
    %8 = tpu.matmul %6, %7, %cst {dimension_numbers = #tpu.dot_dimension_numbers<[1], [0], [0], [1], [0, 0, 1, 1], [], []>} : vector<16x16xbf16>, vector<16x128xbf16>, vector<16x128xf32> -> vector<16x128xf32>
    %c1 = arith.constant 1 : index
    %c0_8 = arith.constant 0 : index
    %c0_9 = arith.constant 0 : index
    %9 = vector.load %arg4[%c1, %c0_8, %c0_9] : memref<3x16x16xbf16, #tpu.memory_space<vmem>>, vector<1x16x16xbf16>
    %10 = vector.shape_cast %9 : vector<1x16x16xbf16> to vector<16x16xbf16>
    %11 = vector.extract_strided_slice %4 {offsets = [0, 1], sizes = [16, 128], strides = [1, 1]} : vector<16x256xbf16> to vector<16x128xbf16>
    %cst_10 = arith.constant dense<0.000000e+00> : vector<16x128xf32>
    %12 = tpu.matmul %10, %11, %cst_10 {dimension_numbers = #tpu.dot_dimension_numbers<[1], [0], [0], [1], [0, 0, 1, 1], [], []>} : vector<16x16xbf16>, vector<16x128xbf16>, vector<16x128xf32> -> vector<16x128xf32>
    %13 = arith.addf %8, %12 : vector<16x128xf32>
    %c2 = arith.constant 2 : index
    %c0_11 = arith.constant 0 : index
    %c0_12 = arith.constant 0 : index
    %14 = vector.load %arg4[%c2, %c0_11, %c0_12] : memref<3x16x16xbf16, #tpu.memory_space<vmem>>, vector<1x16x16xbf16>
    %15 = vector.shape_cast %14 : vector<1x16x16xbf16> to vector<16x16xbf16>
    %16 = vector.extract_strided_slice %4 {offsets = [0, 2], sizes = [16, 128], strides = [1, 1]} : vector<16x256xbf16> to vector<16x128xbf16>
    %cst_13 = arith.constant dense<0.000000e+00> : vector<16x128xf32>
    %17 = tpu.matmul %15, %16, %cst_13 {dimension_numbers = #tpu.dot_dimension_numbers<[1], [0], [0], [1], [0, 0, 1, 1], [], []>} : vector<16x16xbf16>, vector<16x128xbf16>, vector<16x128xf32> -> vector<16x128xf32>
    %18 = arith.addf %13, %17 : vector<16x128xf32>
    %19 = tpu.iota {dimensions = array<i32: 1>} : vector<16x128xi32>
    %c128_i32 = arith.constant 128 : i32
    %20 = arith.muli %arg1, %c128_i32 : i32
    %21 = vector.broadcast %20 : i32 to vector<16x128xi32>
    %22 = arith.addi %19, %21 : vector<16x128xi32>
    %c16_i32 = arith.constant 16 : i32
    %23 = vector.broadcast %c16_i32 : i32 to vector<16x128xi32>
    %24 = arith.cmpi slt, %22, %23 : vector<16x128xi32>
    %cst_14 = arith.constant 0.000000e+00 : f32
    %25 = vector.broadcast %cst_14 : f32 to vector<16x128xf32>
    %26 = arith.select %24, %18, %25 : vector<16x128xi1>, vector<16x128xf32>
    %27 = arith.truncf %26 : vector<16x128xf32> to vector<16x128xbf16>
    %c0_15 = arith.constant 0 : index
    %c0_16 = arith.constant 0 : index
    %c0_17 = arith.constant 0 : index
    %28 = vector.load %arg5[%c0_15, %c0_16, %c0_17] : memref<1x16x128xbf16, #tpu.memory_space<vmem>>, vector<1x16x128xbf16>
    %29 = vector.shape_cast %28 : vector<1x16x128xbf16> to vector<16x128xbf16>
    %30 = vector.shape_cast %27 : vector<16x128xbf16> to vector<1x16x128xbf16>
    tpu.vector_store %arg5[%c0_15, %c0_16, %c0_17], %30 {strides = array<i32>} : memref<1x16x128xbf16, #tpu.memory_space<vmem>>, vector<1x16x128xbf16>,
    %cst_18 = arith.constant dense<0.000000e+00> : vector<16xf32>
    %31 = vector.multi_reduction <add>, %26, %cst_18 [1] : vector<16x128xf32> to vector<16xf32>
    %32 = vector.shape_cast %31 : vector<16xf32> to vector<16x1xf32>
    %33 = arith.mulf %26, %26 : vector<16x128xf32>
    %cst_19 = arith.constant dense<0.000000e+00> : vector<16xf32>
    %34 = vector.multi_reduction <add>, %33, %cst_19 [1] : vector<16x128xf32> to vector<16xf32>
    %35 = vector.shape_cast %34 : vector<16xf32> to vector<16x1xf32>
    %36 = tpu.iota {dimensions = array<i32: 1>} : vector<16x128xi32>
    %c0_i32 = arith.constant 0 : i32
    %37 = vector.broadcast %c0_i32 : i32 to vector<16x128xi32>
    %38 = arith.cmpi eq, %36, %37 : vector<16x128xi32>
    %cst_20 = arith.constant 0.000000e+00 : f32
    %39 = vector.shape_cast %32 : vector<16x1xf32> to vector<16x1xf32>
    %40 = vector.broadcast %39 : vector<16x1xf32> to vector<16x128xf32>
    %41 = vector.broadcast %cst_20 : f32 to vector<16x128xf32>
    %42 = arith.select %38, %40, %41 : vector<16x128xi1>, vector<16x128xf32>
    %c1_i32 = arith.constant 1 : i32
    %43 = vector.broadcast %c1_i32 : i32 to vector<16x128xi32>
    %44 = arith.cmpi eq, %36, %43 : vector<16x128xi32>
    %cst_21 = arith.constant 0.000000e+00 : f32
    %45 = vector.shape_cast %35 : vector<16x1xf32> to vector<16x1xf32>
    %46 = vector.broadcast %45 : vector<16x1xf32> to vector<16x128xf32>
    %47 = vector.broadcast %cst_21 : f32 to vector<16x128xf32>
    %48 = arith.select %44, %46, %47 : vector<16x128xi1>, vector<16x128xf32>
    %49 = arith.addf %42, %48 : vector<16x128xf32>
    %c0_i32_22 = arith.constant 0 : i32
    %50 = arith.cmpi eq, %arg1, %c0_i32_22 : i32
    %51 = arith.extui %50 : i1 to i32
    %c0_i32_23 = arith.constant 0 : i32
    %52 = arith.cmpi ne, %51, %c0_i32_23 : i32
    scf.if %52 {
      %cst_30 = arith.constant 0.000000e+00 : f32
      %59 = vector.broadcast %cst_30 : f32 to vector<1x16x128xf32>
      %c0_31 = arith.constant 0 : index
      %c0_32 = arith.constant 0 : index
      %c0_33 = arith.constant 0 : index
      %60 = vector.load %arg6[%c0_31, %c0_32, %c0_33] : memref<1x16x128xf32, #tpu.memory_space<vmem>>, vector<1x16x128xf32>
      tpu.vector_store %arg6[%c0_31, %c0_32, %c0_33], %59 {strides = array<i32>} : memref<1x16x128xf32, #tpu.memory_space<vmem>>, vector<1x16x128xf32>,
    } else {
    }
    %c0_24 = arith.constant 0 : index
    %c0_25 = arith.constant 0 : index
    %c0_26 = arith.constant 0 : index
    %53 = vector.load %arg6[%c0_24, %c0_25, %c0_26] : memref<1x16x128xf32, #tpu.memory_space<vmem>>, vector<1x16x128xf32>
    %54 = vector.shape_cast %53 : vector<1x16x128xf32> to vector<16x128xf32>
    %55 = arith.addf %54, %49 : vector<16x128xf32>
    %c0_27 = arith.constant 0 : index
    %c0_28 = arith.constant 0 : index
    %c0_29 = arith.constant 0 : index
    %56 = vector.load %arg6[%c0_27, %c0_28, %c0_29] : memref<1x16x128xf32, #tpu.memory_space<vmem>>, vector<1x16x128xf32>
    %57 = vector.shape_cast %56 : vector<1x16x128xf32> to vector<16x128xf32>
    %58 = vector.shape_cast %55 : vector<16x128xf32> to vector<1x16x128xf32>
    tpu.vector_store %arg6[%c0_27, %c0_28, %c0_29], %58 {strides = array<i32>} : memref<1x16x128xf32, #tpu.memory_space<vmem>>, vector<1x16x128xf32>,
    return
  }
  func.func @transform_0(%arg0: i32, %arg1: i32) -> (i32, i32, i32) {
    %c0_i32 = arith.constant 0 : i32
    %c0_i32_0 = arith.constant 0 : i32
    return %arg0, %c0_i32, %arg1 : i32, i32, i32
  }
  func.func @transform_1(%arg0: i32, %arg1: i32) -> (i32, i32, i32) {
    %c1_i32 = arith.constant 1 : i32
    %0 = arith.addi %arg1, %c1_i32 : i32
    %c1_i32_0 = arith.constant 1 : i32
    %1 = arith.muli %0, %c1_i32_0 : i32
    %c0_i32 = arith.constant 0 : i32
    %c0_i32_1 = arith.constant 0 : i32
    return %arg0, %c0_i32, %1 : i32, i32, i32
  }
  func.func @transform_2(%arg0: i32, %arg1: i32) -> (i32, i32, i32) {
    %c0_i32 = arith.constant 0 : i32
    %c0_i32_0 = arith.constant 0 : i32
    %c0_i32_1 = arith.constant 0 : i32
    %c0_i32_2 = arith.constant 0 : i32
    return %c0_i32, %c0_i32_0, %c0_i32_1 : i32, i32, i32
  }
  func.func @transform_3(%arg0: i32, %arg1: i32) -> (i32, i32, i32) {
    %c0_i32 = arith.constant 0 : i32
    %c0_i32_0 = arith.constant 0 : i32
    return %arg0, %c0_i32, %arg1 : i32, i32, i32
  }
  func.func @transform_4(%arg0: i32, %arg1: i32) -> (i32, i32, i32) {
    %c0_i32 = arith.constant 0 : i32
    %c0_i32_0 = arith.constant 0 : i32
    %c0_i32_1 = arith.constant 0 : i32
    return %arg0, %c0_i32, %c0_i32_0 : i32, i32, i32
  }
}

</mosaic_0001>

<bundles_post_ra>
// kernel: tpu_custom_call.1
= control target key start
LH: loop header
LB: loop body
LE: loop exit
PB: predicated region body
PF: predicated region fallthrough
CT: control target
= control target key end

     0   :  { %s1490_s0 = inlined_call_operand.hbm [shape: bf16[2,16,256], index: 0, kind: input, shape index: {}]   ;;  %s1491_s1 = inlined_call_operand.hbm [shape: bf16[2,16,256], index: 1, kind: input, shape index: {}]   ;;  %s1492_s2 = inlined_call_operand.hbm [shape: bf16[3,16,16], index: 2, kind: input, shape index: {}]   ;;  %s1493_s3 = inlined_call_operand.hbm [shape: bf16[2,16,128], index: 3, kind: output, shape index: {0}]   ;;  %s1494_s4 = inlined_call_operand.hbm [shape: f32[2,16,128], index: 4, kind: output, shape index: {1}]  }
   0x1   :  { %1507 = sst [smem:[#allocation19_spill]] %s1490_s0 }
   0x2   :  { %1508 = sst [smem:[#allocation20_spill]] %s1492_s2 }
   0x3   :  { %10 = vsyncpa [#allocation3], 0 }
   0x4   :  { %12 = vsyncpa [#allocation3 + $0x1], 0 }
   0x5   :  { %13 = vsyncpa [#allocation6], 0 }
   0x6   :  { %15 = vsyncpa [#allocation6 + $0x1], 0 }
   0x7   :  { %16 = vsyncpa [#allocation4], 0 }
   0x8   :  { %18 = vsyncpa [#allocation4 + $0x1], 0 }
   0x9   :  { %19 = vsyncpa [#allocation10], 0 }
   0xa   :  { %21 = vsyncpa [#allocation10 + $0x1], 0  ;;  %s1158_s15 = smov 0   ;;  %s1160_s16 = smov 0  }
   0xb   :  { %s1162_s17 = smov 0   ;;  %s1164_s18 = smov 0  }
   0xc   :  { %s1166_s19 = smov 0   ;;  %s1168_s20 = smov 0  }
   0xd LB: > { %1509 = sst [smem:[#allocation16_spill]] %s1103_s17  ;;  %s1189_s21 = sadd.s32 4294967295, %s1115_s20   ;;  %s1115_s20 = sphi %s1168_s20, %s27_s20   ;;  %s1111_s19 = sphi %s1166_s19, %s1541_s19   ;;  %s1107_s18 = sphi %s1164_s18, %s1540_s18   ;;  %s1103_s17 = sphi %s1162_s17, %s1536_s17   ;;  %s1099_s16 = sphi %s1160_s16, %s1539_s16   ;;  %s1095_s15 = sphi %s1158_s15, %s1538_s15  }
   0xe   : > { %s730_s22 = sadd.s32 4294967294, %s1115_s20   ;;  %p55_p0 = scmp.ne.s32.totalorder %s1103_s17, %s1099_s16 }
   0xf   : > { %p56_p1 = scmp.eq.s32.totalorder %s1115_s20, 0  ;;  %p61_p2 = scmp.ne.s32.totalorder %s1099_s16, %s1095_s15 }
  0x10   : > { %p1495_p3 = scmp.eq.s32.totalorder %s1189_s21, 0  ;;  %p138_p4 = scmp.eq.s32.totalorder %s1189_s21, 1 }
  0x11   : > { %p1200_p5 = por %p56_p1, %p55_p0  ;;  %p144_p6 = scmp.eq.s32.totalorder %s730_s22, 1 }
  0x12   : > { %p1206_p7 = por %p1495_p3, %p61_p2  ;;  %p1210_p8 = por %p138_p4, %p55_p0 }
  0x13   : > { %p1214_p9 = por %p144_p6, %p61_p2  ;;  %p731_p10 = scmp.ge.s32.totalorder %s1115_s20, 1 }
  0x14   : > { %s1511_s25 = scalar_select %p1206_p7, 1, 0 }
  0x15   : > { %s1512_s26 = scalar_select %p1210_p8, 1, 0 }
  0x16   : > { %s1513_s27 = scalar_select %p1214_p9, 1, 0 }
  0x17   : > { %p177_p11 = scmp.lt.s32.totalorder %s1115_s20, 3  ;;  %s1117_s29 = smov [#allocation7]  }
  0x18   : > { %s189_s30 = sshll.u32 %s1117_s29, 4  ;;  %p836_p1 = scmp.lt.s32.totalorder %s1115_s20, 2  ;;  %s1224_s30 = int_to_ptr.vmem [resolvable:$true] %s189_s30 }
  0x19   : > { %p1220_p12 = pnand %p731_p10, %p177_p11  ;;  %s39_s7 = sadd.s32 1, %s1111_s19 }
  0x1a   : > { %p1238_p4 = pnand %p836_p1, %p1200_p5  ;;  %p1243_p6 = scmp.ge.s32.totalorder %s39_s7, 2 }
  0x1b   : > { %s1514_s28 = scalar_select %p1220_p12, 1, 0 }
  0x1c   : > { %p817_p13 = pneg %p1220_p12  ;;  %s1518_s2 = sld [smem:[#allocation20_spill]] }
  0x1d   : > { %s1516_s6 = scalar_select %p1238_p4, 1, 0 }
  0x1e   : > { %p1232_p2 = pnand %p817_p13, %p1495_p3 }
  0x1f   : > { %s1517_s8 = scalar_select %p1243_p6, 1, 0 }
  0x20   : > { %p906_p11 = pneg %p1232_p2 }
  0x22   : > { %s904_s11 = scalar_lea.hbm %s1518_s2, 384 }
  0x23   : > { %p905_p10 = scmp.ne.s32.totalorder %s1518_s2, %s904_s11  ;;  %p911_p1 = scmp.lt.u32.totalorder %s904_s11, %s1518_s2 }
  0x25   : > { %p907_p13 = pnand %p906_p11, %p905_p10 }
  0x27   : > { %p908_p5 = pneg %p907_p13 }
  0x29   : > { %p913_p0 = pnand %p911_p1, %p908_p5 }
  0x2b   : > { %916 = shalt.err (!%p913_p0)
}
  0x2c   : > { %s917_s24 = scalar_lea.vmem %s1224_s30, 384  ;;  %p925_p7 = scmp.lt.s32.totalorder %s1224_s30, %s1224_s30 }
  0x2d   : > { %p918_p3 = scmp.ne.s32.totalorder %s1224_s30, %s917_s24  ;;  %p926_p12 = scmp.lt.s32.totalorder %s917_s24, %s917_s24 }
  0x2f   : > { %p920_p9 = pnand %p918_p3, %p906_p11  ;;  %p927_p4 = por %p926_p12, %p925_p7 }
  0x31   : > { %p921_p8 = pneg %p920_p9 }
  0x33   : > { %p928_p6 = pnand %p927_p4, %p921_p8 }
  0x35   : > { %931 = shalt.err (!%p928_p6)
}
  0x36   : > { %s1500_s29 = smov 64   ;;  %s1503_s9 = smov 4  }
  0x37   : > { %820 = dma.hbm_to_vmem [thread:$0]  (!%p1232_p2), %s1518_s2, 384, %s1224_s30, [#allocation6], %s1500_s29, %s1500_s29, %s1503_s9  }
  0x38   : > { %s203_s12 = sand.u32 1, %s1103_s17   ;;  %p1519_p3 = scmp.ne.s32.totalorder %s1517_s8, 0 }
  0x39   : > { %s1276_s13 = sshll.u32 %s203_s12, 3  ;;  %s1502_s5 = sshll.u32 %s1111_s19, 8 }
  0x3a   : > { %s1543_s7 = smov (%p1519_p3, %s39_s7), 0  ;;  %s1521_s0 = sld [smem:[#allocation19_spill]] }
  0x3b   : > { %1520 = sst [smem:[#allocation17_spill]] %s1543_s7  ;;  %s43_s14 = ssub.s32 %s1111_s19, %s1543_s7 }
  0x3c   : > { %p46_p7 = scmp.eq.s32.totalorder %s43_s14, 0  ;;  %s207_s30 = scalar_lea.vmem [#allocation2], %s1276_s13 }
  0x3d   : > { %s215_s8 = sshll.u32 %s207_s30, 4  ;;  %s1522_s10 = sadd.s32 1, %s1103_s17  ;;  %s1294_s8 = int_to_ptr.vmem [resolvable:$true] %s215_s8 }
  0x3e   : > { %s1292_s11 = scalar_select %p46_p7, %s1103_s17, %s1522_s10  }
  0x3f   : > { %s1296_s29 = scalar_lea.sflag [#allocation3], %s203_s12  ;;  %p1524_p9 = scmp.ne.s32.totalorder %s1516_s6, 0 }
  0x40   : > { %s1286_s23 = scalar_lea.hbm %s1521_s0, %s1502_s5  ;;  %1523 = sst [smem:[#allocation18_spill]] %s1292_s11 }
  0x41   : > { %s932_s14 = scalar_lea.hbm %s1286_s23, 128  ;;  %p934_p12 = pneg %p1524_p9 }
  0x42   : > { %p933_p8 = scmp.ne.s32.totalorder %s1286_s23, %s932_s14  ;;  %s937_s5 = scalar_lea.hbm %s1521_s0, 512 }
  0x43   : > { %p938_p4 = scmp.lt.u32.totalorder %s1286_s23, %s1521_s0  ;;  %p939_p6 = scmp.lt.u32.totalorder %s937_s5, %s932_s14 }
  0x44   : > { %p935_p0 = pnand %p934_p12, %p933_p8  ;;  %p941_p11 = scmp.lt.u32.totalorder %s932_s14, %s1286_s23 }
  0x45   : > { %p940_p10 = por %p939_p6, %p938_p4 }
  0x46   : > { %p936_p2 = pneg %p935_p0 }
  0x47   : > { %p942_p13 = por %p941_p11, %p940_p10 }
  0x49   : > { %p943_p5 = pnand %p942_p13, %p936_p2 }
  0x4b   : > { %946 = shalt.err (!%p943_p5)
}
  0x4c   : > { %s947_s12 = scalar_lea.vmem %s1294_s8, 128  ;;  %s1120_s10 = smov [#allocation2]  }
  0x4d   : > { %p948_p1 = scmp.ne.s32.totalorder %s1294_s8, %s947_s12  ;;  %s952_s22 = sshll.u32 %s1120_s10, 4  ;;  %s953_s22 = int_to_ptr.vmem [resolvable:$false] %s952_s22 }
  0x4e   : > { %s954_s9 = scalar_lea.vmem %s953_s22, 256  ;;  %p955_p8 = scmp.lt.s32.totalorder %s1294_s8, %s953_s22 }
  0x4f   : > { %p950_p3 = pnand %p948_p1, %p934_p12  ;;  %p956_p0 = scmp.lt.s32.totalorder %s954_s9, %s947_s12 }
  0x51   : > { %p951_p7 = pneg %p950_p3  ;;  %p957_p4 = por %p956_p0, %p955_p8 }
  0x53   : > { %p958_p6 = pnand %p957_p4, %p951_p7 }
  0x55   : > { %961 = shalt.err (!%p958_p6)
}
  0x56   : > { %s1121_s5 = smov 128   ;;  %s1525_s14 = smov 4  }
  0x57   : > { %s1526_s24 = smov 64   ;;  %s1527_s30 = sshll.u32 %s1111_s19, 8 }
  0x58   : > { %824 = dma.hbm_to_vmem [thread:$0]  (!%p1524_p9), %s1286_s23, 128, %s1294_s8, %s1296_s29, %s1121_s5, %s1526_s24, %s1525_s14  }
  0x59   : > { %s632_s22 = scalar_lea.hbm %s1491_s1, %s1527_s30  ;;  %s229_s0 = scalar_lea.vmem [#allocation5], %s1276_s13 }
  0x5a   : > { %s1332_s9 = scalar_lea.hbm %s632_s22, 64  ;;  %s238_s2 = sshll.u32 %s229_s0, 4  ;;  %s1335_s2 = int_to_ptr.vmem [resolvable:$true] %s238_s2 }
  0x5b   : > { %s225_s7 = sand.u32 1, %s1115_s20   ;;  %s992_s17 = scalar_lea.hbm %s632_s22, 192 }
  0x5c   : > { %s1338_s11 = scalar_lea.sflag [#allocation6], %s225_s7  ;;  %p963_p2 = scmp.ne.s32.totalorder %s1332_s9, %s992_s17 }
  0x5d   : > { %s967_s8 = scalar_lea.hbm %s1491_s1, 512  ;;  %p968_p13 = scmp.lt.u32.totalorder %s1332_s9, %s1491_s1 }
  0x5e   : > { %p965_p10 = pnand %p963_p2, %p934_p12  ;;  %p969_p5 = scmp.lt.u32.totalorder %s967_s8, %s992_s17 }
  0x5f   : > { %p971_p3 = scmp.lt.u32.totalorder %s992_s17, %s1332_s9 }
  0x60   : > { %p966_p11 = pneg %p965_p10  ;;  %p970_p1 = por %p969_p5, %p968_p13 }
  0x62   : > { %p972_p7 = por %p971_p3, %p970_p1 }
  0x64   : > { %p973_p8 = pnand %p972_p7, %p966_p11 }
  0x66   : > { %976 = shalt.err (!%p973_p8)
}
  0x67   : > { %s977_s0 = scalar_lea.vmem %s1335_s2, 128  ;;  %s1122_s7 = smov [#allocation5]  }
  0x68   : > { %p978_p0 = scmp.ne.s32.totalorder %s1335_s2, %s977_s0  ;;  %s982_s13 = sshll.u32 %s1122_s7, 4  ;;  %s983_s13 = int_to_ptr.vmem [resolvable:$false] %s982_s13 }
  0x69   : > { %s984_s12 = scalar_lea.vmem %s983_s13, 256  ;;  %p985_p2 = scmp.lt.s32.totalorder %s1335_s2, %s983_s13 }
  0x6a   : > { %p980_p4 = pnand %p978_p0, %p934_p12  ;;  %p986_p10 = scmp.lt.s32.totalorder %s984_s12, %s977_s0 }
  0x6c   : > { %p981_p6 = pneg %p980_p4  ;;  %p987_p13 = por %p986_p10, %p985_p2 }
  0x6e   : > { %p988_p5 = pnand %p987_p13, %p981_p6 }
  0x70   : > { %991 = shalt.err (!%p988_p5)
}
  0x71   : > { %827 = dma.hbm_to_vmem [thread:$0]  (!%p1524_p9), %s1332_s9, 128, %s1335_s2, %s1338_s11, %s1121_s5, %s1526_s24, %s1525_s14  }
  0x72   : > { %p1528_p12 = scmp.ne.s32.totalorder %s1514_s28, 0 }
  0x73   : > { %s1369_s17 = sand.u32 (!%p1528_p12), 1, %s1099_s16   ;;  %p1529_p11 = scmp.ne.s32.totalorder (!%p1528_p12), %s1511_s25, 0 }
  0x74   : > { %250 = sbr.rel (%p1528_p12) target bundleno = 639 (0x27f), region = 32  ;;  %s1372_s22 = sshll.u32 (!%p1528_p12), %s1369_s17, 3 }
  0x75   : > { %s253_s6 = scalar_lea.sflag (!%p1528_p12), [#allocation3], %s1369_s17  ;;  %s256_s23 = scalar_lea.vmem (!%p1528_p12), [#allocation2], %s1372_s22 }
  0x7b   : > { %1074 = dma.done.wait (%p1529_p11), %s253_s6, 128  }
  0x7c   : > { %1076 = vsyncadd (%p1529_p11), %s253_s6, 4294967168  ;;  %s261_s2 = sand.u32 1, %s1189_s21   ;;  %s265_s11 = scalar_lea.vmem [#allocation5], %s1372_s22 }
  0x7d   : > { %s262_s28 = scalar_lea.sflag [#allocation6], %s261_s2 }
  0x7e   : > { %1078 = dma.done.wait (%p1529_p11), %s262_s28, 128  }
  0x7f   : > { %1080 = vsyncadd (%p1529_p11), %s262_s28, 4294967168  ;;  %p1530_p9 = scmp.eq.s32.totalorder %s1189_s21, 0 }
  0x81   : > { %1082 = dma.done.wait (%p1530_p9), [#allocation6], 384   ;;  %p1531_p1 = pmov %p1530_p9 }
  0x82   : > { %v1123_v0 = vmov 0.0   ;;  %vm1124_vm0 = vmmov 0   ;;  %v899_v1 = vld [vmem:[%s256_s23] sm:$0xff]   ;;  %s1125_s5 = smov 126   ;;  %s1126_s14 = smov 127   ;;  %v900_v2 = vld [vmem:[%s265_s11] sm:$0xff]   ;;  %v493_v12 = vlaneseq }
  0x83   : > { %1084 = vsyncadd (%p1531_p1), [#allocation6], 4294966912  ;;  %787 = vmatprep.subr.bf16.mxu0 %v1123_v0  ;;  %789 = vmatprep.mubr.msk.bf16.mxu0 %vm1124_vm0, %v1123_v0  ;;  %v901_v3 = vld [vmem:[#allocation7] sm:$0xff]   ;;  %vm338_vm1 = vcmask 130048   ;;  %vm444_vm2 = vcmask 1031168   ;;  %vm335_vm3 = vcmask 1039360  }
  0x84   : > { %781 = vmatprep.subr.bf16.mxu1 %v1123_v0  ;;  %783 = vmatprep.mubr.msk.bf16.mxu1 %vm1124_vm0, %v1123_v0  ;;  %v902_v10 = vld [vmem:[#allocation7 + $0x8] sm:$0xff]   ;;  %v903_v11 = vld [vmem:[#allocation7 + $0x10] sm:$0xff]   ;;  %v1396_v13 = vand.u32 127, %v493_v12  ;;  %s296_s21 = scalar_lea.vmem [#allocation8], %s1372_s22  ;;  %s768_s24 = sshll.u32 %s1107_s18, 7 }
  0x85   : > { %440 = vrot.lane.b32.xlu1 %v899_v1, %s1125_s5  ;;  %331 = vrot.lane.b32.xlu0 %v899_v1, %s1126_s14  ;;  %s561_s25 = sshll.u32 %s296_s21, 4  ;;  %s1404_s8 = scalar_lea.hbm %s1493_s3, %s768_s24  ;;  %s1406_s25 = int_to_ptr.vmem [resolvable:$true] %s561_s25 }
  0x86   : > { %788 = vmatpush3.bf16.msra.mxu0 %v899_v1  ;;  %vm498_vm4 = vcmp.lt.s32.totalorder %v1396_v13, 16  ;;  %s542_s30 = scalar_lea.sflag [#allocation4], %s1369_s17  ;;  %s993_s10 = scalar_lea.vmem %s1406_s25, 128 }
  0x87   : > { %793 = vmatprep.subr.bf16.mxu0 %v1123_v0  ;;  %p994_p3 = scmp.ne.s32.totalorder %s1406_s25, %s993_s10  ;;  %p1532_p7 = scmp.ne.s32.totalorder %s1512_s26, 0 }
  0x88   : > { %s1127_s0 = smov [#allocation8]  }
  0x89   : > { %442 = vrot.lane.b32.xlu1 %v900_v2, %s1125_s5  ;;  %333 = vrot.lane.b32.xlu0 %v900_v2, %s1126_s14  ;;  %p995_p8 = pnand %p994_p3, %p1532_p7  ;;  %s997_s7 = sshll.u32 %s1127_s0, 4  ;;  %s998_s7 = int_to_ptr.vmem [resolvable:$false] %s997_s7 }
  0x8a   : > { %790 = vmatmul.mubr.msk.bf16.vlgmr.msra.gmra.mrb[0].mxu0 %vm338_vm1, %v901_v3  ;;  %s999_s13 = scalar_lea.vmem %s998_s7, 256  ;;  %p1000_p4 = scmp.lt.s32.totalorder %s1406_s25, %s998_s7 }
  0x8b   : > { %795 = vmatprep.mubr.msk.bf16.mxu0 %vm1124_vm0, %v1123_v0  ;;  %p996_p0 = pneg %p995_p8  ;;  %p1001_p6 = scmp.lt.s32.totalorder %s999_s13, %s993_s10 }
  0x8d   : > { %p1002_p2 = por %p1001_p6, %p1000_p4 }
  0x8f   : > { %p1003_p10 = pnand %p1002_p2, %p996_p0 }
  0xf7   : > { %v441_v4 = vpop.permute.xlu1 %440  ;;  %v332_v5 = vpop.permute.xlu0 %331 }
  0xfb   : > { %v443_v6 = vpop.permute.xlu1 %442  ;;  %v334_v7 = vpop.permute.xlu0 %333 }
  0xfc   : > { %v445_v8 = vsel %vm444_vm2, %v441_v4, %v443_v6  ;;  %v336_v9 = vsel %vm335_vm3, %v332_v5, %v334_v7 }
  0xfd   : > { %782 = vmatpush3.bf16.msra.mxu1 %v336_v9  ;;  %794 = vmatpush3.bf16.msra.mxu0 %v445_v8 }
 0x100   : > { %784 = vmatmul.mubr.msk.bf16.vlgmr.msra.gmra.mrb[0].mxu1 %vm338_vm1, %v902_v10  ;;  %796 = vmatmul.mubr.msk.bf16.vlgmr.msra.gmra.mrb[0].mxu0 %vm338_vm1, %v903_v11 }
 0x1d3   : > { %v376_v14 = vpop.f32.mrb[0].mxu1  ;;  %v484_v15 = vpop.f32.mrb[0].mxu0 }
 0x1d4   : > { %v799_v16 = vadd.f32 %v484_v15, %v376_v14  ;;  %v785_v17 = vpop.f32.mrb[1].mxu1  ;;  %v797_v18 = vpop.f32.mrb[1].mxu0 }
 0x1d5   : > { %v379_v19 = vpop.f32.mrb[2].mxu1  ;;  %v487_v20 = vpop.f32.mrb[2].mxu0 }
 0x1d6   : > { %v800_v21 = vadd.f32 %v487_v20, %v379_v19  ;;  %v798_v22 = vpop.f32.mrb[3].mxu0  ;;  %v499_v23 = vsel %vm498_vm4, %v799_v16, 0.0  ;;  %v786_v24 = vpop.f32.mrb[3].mxu1 }
 0x1d7   : > { %511 = vadd.xlane.f32.xlu0 %v499_v23  ;;  %v515_v27 = vmul.f32 %v499_v23, %v499_v23 }
 0x1d8   : > { %v500_v25 = vsel %vm498_vm4, %v800_v21, 0.0 }
 0x1d9   : > { %513 = vadd.xlane.f32.xlu1 %v500_v25  ;;  %v773_v26 = vpack.c.bf16 %v500_v25, %v499_v23  ;;  %v516_v28 = vmul.f32 %v500_v25, %v500_v25 }
 0x1db   : > { %774 = vst [vmem:[%s296_s21] sm:$0xff] %v773_v26   ;;  %517 = vadd.xlane.f32.xlu0 %v515_v27 }
 0x1df   : > { %519 = vadd.xlane.f32.xlu0 %v516_v28 }
 0x1e0   : > { %1006 = shalt.err (!%p1003_p10)
}
 0x1e1   : > { %s1007_s12 = scalar_lea.hbm %s1404_s8, 128  ;;  %s1011_s23 = scalar_lea.hbm %s1493_s3, 256 }
 0x1e2   : > { %p1008_p13 = scmp.ne.s32.totalorder %s1404_s8, %s1007_s12  ;;  %p1012_p11 = scmp.lt.u32.totalorder %s1404_s8, %s1493_s3 }
 0x1e3   : > { %p1013_p9 = scmp.lt.u32.totalorder %s1011_s23, %s1007_s12  ;;  %p1015_p3 = scmp.lt.u32.totalorder %s1007_s12, %s1404_s8 }
 0x1e4   : > { %p1009_p5 = pnand %p1008_p13, %p1532_p7 }
 0x1e5   : > { %p1014_p1 = por %p1013_p9, %p1012_p11 }
 0x1e6   : > { %p1010_p12 = pneg %p1009_p5 }
 0x1e7   : > { %p1016_p8 = por %p1015_p3, %p1014_p1 }
 0x1e9   : > { %p1017_p0 = pnand %p1016_p8, %p1010_p12 }
 0x1eb   : > { %1020 = shalt.err (!%p1017_p0)
}
 0x1ec   : > { %s1128_s11 = smov 64   ;;  %s1129_s5 = smov 4   ;;  %vm521_vm5 = vcmp.eq.s32.totalorder %v1396_v13, 0  ;;  %vm524_vm6 = vcmp.eq.s32.totalorder %v1396_v13, 1 }
 0x1ed   : > { %813 = dma.vmem_to_hbm [thread:$0]  (%p1532_p7), %s1406_s25, 128, %s1404_s8, %s542_s30, %s1128_s11, %s1128_s11, %s1129_s5  }
 0x1ee   : > { %s745_s14 = sshll.u32 %s1369_s17, 4  ;;  %s769_s21 = sshll.u32 %s1107_s18, 8 }
 0x1ef   : > { %s303_s24 = scalar_lea.vmem [#allocation9], %s745_s14  ;;  %s1439_s8 = scalar_lea.hbm %s1494_s4, %s769_s21 }
 0x1f0   : > { %s577_s9 = sshll.u32 %s303_s24, 4  ;;  %s547_s30 = scalar_lea.sflag [#allocation10], %s1369_s17  ;;  %s1441_s9 = int_to_ptr.vmem [resolvable:$true] %s577_s9 }
 0x1f1   : > { %s1021_s10 = scalar_lea.vmem %s1441_s9, 256  ;;  %s1130_s18 = smov [#allocation9]  }
 0x1f2   : > { %p1022_p4 = scmp.ne.s32.totalorder %s1441_s9, %s1021_s10  ;;  %s1025_s0 = sshll.u32 %s1130_s18, 4  ;;  %s1026_s0 = int_to_ptr.vmem [resolvable:$false] %s1025_s0 }
 0x1f3   : > { %s1027_s7 = scalar_lea.vmem %s1026_s0, 512  ;;  %p1028_p10 = scmp.lt.s32.totalorder %s1441_s9, %s1026_s0 }
 0x1f4   : > { %p1023_p6 = pnand %p1022_p4, %p1532_p7  ;;  %p1029_p13 = scmp.lt.s32.totalorder %s1027_s7, %s1021_s10 }
 0x1f6   : > { %p1024_p2 = pneg %p1023_p6  ;;  %p1030_p5 = por %p1029_p13, %p1028_p10 }
 0x1f8   : > { %p1031_p12 = pnand %p1030_p5, %p1024_p2 }
 0x264   : > { %v512_v29 = vpop.xlane.xlu0 %511 }
 0x265   : > { %v522_v31 = vsel %vm521_vm5, %v512_v29, 0.0 }
 0x266   : > { %v514_v33 = vpop.xlane.xlu1 %513 }
 0x267   : > { %v523_v36 = vsel %vm521_vm5, %v514_v33, 0.0 }
 0x268   : > { %v518_v30 = vpop.xlane.xlu0 %517 }
 0x269   : > { %v525_v32 = vsel %vm524_vm6, %v518_v30, 0.0 }
 0x26a   : > { %v527_v34 = vadd.f32 %v525_v32, %v522_v31 }
 0x26c   : > { %v520_v35 = vpop.xlane.xlu0 %519  ;;  %539 = vst [vmem:[%s303_s24] sm:$0xff] %v527_v34 }
 0x26d   : > { %v526_v37 = vsel %vm524_vm6, %v520_v35, 0.0 }
 0x26e   : > { %v528_v38 = vadd.f32 %v526_v37, %v523_v36 }
 0x270   : > { %540 = vst [vmem:[%s303_s24 + $0x8] sm:$0xff] %v528_v38 }
 0x271   : > { %1034 = shalt.err (!%p1031_p12)
}
 0x272   : > { %s1035_s13 = scalar_lea.hbm %s1439_s8, 256  ;;  %s1039_s6 = scalar_lea.hbm %s1494_s4, 512 }
 0x273   : > { %p1036_p11 = scmp.ne.s32.totalorder %s1439_s8, %s1035_s13  ;;  %p1040_p3 = scmp.lt.u32.totalorder %s1439_s8, %s1494_s4 }
 0x274   : > { %p1041_p8 = scmp.lt.u32.totalorder %s1039_s6, %s1035_s13  ;;  %p1043_p4 = scmp.lt.u32.totalorder %s1035_s13, %s1439_s8 }
 0x275   : > { %p1037_p9 = pnand %p1036_p11, %p1532_p7 }
 0x276   : > { %p1042_p0 = por %p1041_p8, %p1040_p3 }
 0x277   : > { %p1038_p1 = pneg %p1037_p9 }
 0x278   : > { %p1044_p6 = por %p1043_p4, %p1042_p0 }
 0x27a   : > { %p1045_p2 = pnand %p1044_p6, %p1038_p1 }
 0x27c   : > { %1048 = shalt.err (!%p1045_p2)
}
 0x27d   : > { %s1131_s28 = smov 128   ;;  %s1132_s11 = smov 8  }
 0x27e   : > { %814 = dma.vmem_to_hbm [thread:$0]  (%p1532_p7), %s1441_s9, 256, %s1439_s8, %s547_s30, %s1131_s28, %s1131_s28, %s1132_s11  }
 0x27f PF: > { %s592_s5 = sand.u32 1, %s1095_s15   ;;  %p1533_p10 = scmp.ne.s32.totalorder %s1513_s27, 0 }
 0x280   : > { %p1534_p13 = scmp.ge.s32.totalorder %s1115_s20, 2  ;;  %s593_s14 = scalar_lea.sflag [#allocation4], %s592_s5 }
 0x282   : > { %p829_p5 = pnand %p1534_p13, %p1533_p10 }
 0x284   : > { %1086 = dma.done.wait (!%p829_p5), %s593_s14, 128  }
 0x285   : > { %1088 = vsyncadd (!%p829_p5), %s593_s14, 4294967168  ;;  %s602_s21 = scalar_lea.sflag [#allocation10], %s592_s5 }
 0x286   : > { %1090 = dma.done.wait (!%p829_p5), %s602_s21, 256  }
 0x287   : > { %1092 = vsyncadd (!%p829_p5), %s602_s21, 4294967040  ;;  %s27_s20 = sadd.s32 1, %s1115_s20   ;;  %s1535_s26 = sld [smem:[#allocation16_spill]] }
 0x288   : > { %p24_p12 = scmp.ge.s32.totalorder %s27_s20, 4   ;;  %s1536_s17 = sld [smem:[#allocation18_spill]] }
 0x289   : > { %s1537_s24 = sld [smem:[#allocation17_spill]]  ;;  %s1538_s15 = smov %s1099_s16 }
 0x28a   : > { %s1540_s18 = smov %s1111_s19  ;;  %26 = sbr.rel (!%p24_p12) target bundleno = 13 (0xd), region = 117 }
 0x28d   : > { %s1539_s16 = smov %s1535_s26 }
 0x28f   : > { %s1541_s19 = smov %s1537_s24 }
 0x291   :  { %607 = vsyncpa [#allocation3], 1 }
 0x292   :  { %609 = vsyncpa [#allocation3 + $0x1], 1 }
 0x293   :  { %610 = vsyncpa [#allocation6], 1 }
 0x294   :  { %612 = vsyncpa [#allocation6 + $0x1], 1 }
 0x295   :  { %613 = vsyncpa [#allocation4], 1 }
 0x296   :  { %615 = vsyncpa [#allocation4 + $0x1], 1 }
 0x297   :  { %616 = vsyncpa [#allocation10], 1 }
 0x298   :  { %618 = vsyncpa [#allocation10 + $0x1], 1 }

</bundles_post_ra>
